<compile_context>
chip_gen: v7x
topology: tpu7x:2x2x1
jax: 0.10.0
libtpu: 0.0.40
codegen_flags: <defaults>
</compile_context>

<pallas_src>
import jax
import jax.numpy as jnp
from jax.experimental import pallas as pl
from jax.experimental.pallas import tpu as pltpu


def _round_up(n, m):
    return (n + m - 1) // m * m


def _silu(v):
    # SiLU(x) = x * sigmoid(x); jax.nn.sigmoid lowers to the EUP logistic op,
    # keeping the reciprocal off the VALU slots.
    return v * jax.nn.sigmoid(v)


def simple_mlp_kernel(
    x_ref, t_ref,
    wt1_ref, bt1_ref, wt2_ref, bt2_ref,          # time-embedding MLP
    w1x_ref, w1t_ref, b1_ref,                    # net layer 0 (split for concat)
    w2_ref, b2_ref,                              # net layer 1
    w3_ref, b3_ref,                              # net output layer (unpadded)
    out_ref,
):
    f32 = jnp.float32

    # ---- time embedding ----
    # Layer 0 is Linear(1, T): a K=1 MXU matmul wastes a whole systolic pass,
    # so compute it as a VPU broadcast outer product instead: (TB,1) * (1,T).
    t = t_ref[...]                                                   # (TB, 1)
    h_t = _silu(t * wt1_ref[...] + bt1_ref[...])                     # (TB, T)
    t_embed = _silu(
        jnp.dot(h_t, wt2_ref[...], preferred_element_type=f32)
        + bt2_ref[...])                                              # (TB, T)

    # ---- net: concat([x, t_embed]) @ W1 == x @ W1x + t_embed @ W1t ----
    x = x_ref[...]                                                   # (TB, D)
    d_in = x_ref.shape[1]
    h1_pre = (jnp.dot(t_embed, w1t_ref[...], preferred_element_type=f32)
              + b1_ref[...])                                         # (TB, H1)
    if d_in <= 16:
        # Tiny K: D broadcast-FMAs on the VPU, no nearly-empty MXU pass.
        for d in range(d_in):
            h1_pre = h1_pre + x[:, d:d + 1] * w1x_ref[d:d + 1, :]
    else:
        h1_pre = h1_pre + jnp.dot(x, w1x_ref[...], preferred_element_type=f32)
    h1 = _silu(h1_pre)                                               # (TB, H1)

    h2 = _silu(
        jnp.dot(h1, w2_ref[...], preferred_element_type=f32)
        + b2_ref[...])                                               # (TB, H2)

    # Output layer: unpadded (TB, output_dim) store -> minimal HBM writeback.
    out_ref[...] = (
        jnp.dot(h2, w3_ref[...], preferred_element_type=f32)
        + b3_ref[...]).astype(out_ref.dtype)                         # (TB, O)


def simple_mlp_forward(x, t, params, *, block_rows=2048):
    """x: (B, input_dim) f32, t: (B,) f32  ->  (B, output_dim) f32."""
    f32 = jnp.float32
    B, D = x.shape
    output_dim = params["w3"].shape[1]

    x = x.astype(f32)
    t2d = t.reshape(B, 1).astype(f32)

    # Batch tile: multiple of 8 rows (f32 sublanes).  Aim for >= 2 grid steps
    # so v7x's second TensorCore gets work via the "parallel" axis, capped at
    # block_rows so the fixed per-grid-step overhead is amortized at large B.
    # No jnp.pad: grid = cdiv(B, tb) and Pallas masks the ragged last block.
    tb = max(8, min(block_rows, _round_up(pl.cdiv(B, 2), 8)))
    grid = (pl.cdiv(B, tb),)

    weight_names = ("wt1", "bt1", "wt2", "bt2",
                    "w1x", "w1t", "b1", "w2", "b2", "w3", "b3")
    weights = tuple(params[k] for k in weight_names)

    # Batch-streamed operands: one (tb, feat) block per grid step.
    row_spec = lambda last: pl.BlockSpec((tb, last), lambda i: (i, 0))
    # Weights/biases: constant index_map => fetched once, VMEM-resident across
    # the whole batch grid (no re-DMA per step).
    const_spec = lambda a: pl.BlockSpec(a.shape, lambda i: (0, 0))

    out = pl.pallas_call(
        simple_mlp_kernel,
        out_shape=jax.ShapeDtypeStruct((B, output_dim), f32),
        grid=grid,
        in_specs=[row_spec(D), row_spec(1)] + [const_spec(w) for w in weights],
        out_specs=pl.BlockSpec((tb, output_dim), lambda i: (i, 0)),
        compiler_params=pltpu.CompilerParams(
            dimension_semantics=("parallel",)),
    )(x, t2d, *weights)

    return out


def init_params(key, input_dim, hidden_dims, output_dim, time_embedding_dim=32):
    """Deterministic init mimicking torch.nn.Linear default (U(-k, k), k=1/sqrt(fan_in)).

    Weights are stored transposed relative to PyTorch (shape (fan_in, fan_out))
    so the kernel computes y = x @ W + b.  Everything stays f32 (the kernel is
    streaming-bound, so bf16 MXU operands buy nothing and only hurt accuracy)."""
    def linear(key, fan_in, fan_out):
        kw, kb = jax.random.split(key)
        bound = 1.0 / jnp.sqrt(jnp.float32(fan_in))
        w = jax.random.uniform(kw, (fan_in, fan_out), jnp.float32, -bound, bound)
        b = jax.random.uniform(kb, (1, fan_out), jnp.float32, -bound, bound)
        return w, b

    keys = jax.random.split(key, 5)
    T = time_embedding_dim
    H1, H2 = hidden_dims[0], hidden_dims[1]

    wt1, bt1 = linear(keys[0], 1, T)
    wt2, bt2 = linear(keys[1], T, T)
    w1, b1 = linear(keys[2], input_dim + T, H1)
    w2, b2 = linear(keys[3], H1, H2)
    w3, b3 = linear(keys[4], H2, output_dim)

    # Split first net layer for the in-kernel "concat as split-matmul".
    w1x = w1[:input_dim, :]
    w1t = w1[input_dim:, :]

    return {
        "wt1": wt1, "bt1": bt1,
        "wt2": wt2, "bt2": bt2,
        "w1x": w1x, "w1t": w1t, "b1": b1,
        "w2": w2, "b2": b2,
        "w3": w3, "b3": b3,
    }


def reference_forward(x, t, params):
    """Pure-JAX f32 reference mirroring the PyTorch module exactly (real concat)."""
    silu = lambda v: v * jax.nn.sigmoid(v)
    f32 = jnp.float32
    t2d = t.reshape(-1, 1).astype(f32)
    h_t = silu(jnp.dot(t2d, params["wt1"]) + params["bt1"])
    t_embed = silu(jnp.dot(h_t, params["wt2"]) + params["bt2"])
    x_t = jnp.concatenate([x.astype(f32), t_embed], axis=-1)
    w1 = jnp.concatenate([params["w1x"], params["w1t"]], axis=0)
    h1 = silu(jnp.dot(x_t, w1) + params["b1"])
    h2 = silu(jnp.dot(h1, params["w2"]) + params["b2"])
    return jnp.dot(h2, params["w3"]) + params["b3"]


if __name__ == "__main__":
    # Small shapes consistent with the module's forward:
    #   x: (batch, input_dim), t: (batch,)
    batch, input_dim, output_dim = 8, 4, 4
    hidden_dims = [32, 32]
    time_embedding_dim = 32

    key = jax.random.PRNGKey(0)
    kx, kt, kp = jax.random.split(key, 3)
    x = jax.random.normal(kx, (batch, input_dim), jnp.float32)
    t = jax.random.uniform(kt, (batch,), jnp.float32)

    params = init_params(kp, input_dim, hidden_dims, output_dim, time_embedding_dim)

    out = jax.block_until_ready(simple_mlp_forward(x, t, params))
    ref = jax.block_until_ready(reference_forward(x, t, params))

    assert out.shape == (batch, output_dim)
    # Tolerance allows for MXU f32-pass vs XLA default-precision matmul deltas.
    assert jnp.allclose(out, ref, atol=1e-2, rtol=1e-2), "mismatch vs JAX reference"

    print("KERNEL_OK")
</pallas_src>

<mosaic_0001>
module attributes {stable_mosaic.version = 11 : i64} {
  func.func @simple_mlp_kernel(%arg0: i32, %arg1: memref<8x4xf32, #tpu.memory_space<vmem>>, %arg2: memref<8x1xf32, #tpu.memory_space<vmem>>, %arg3: memref<1x32xf32, #tpu.memory_space<vmem>>, %arg4: memref<1x32xf32, #tpu.memory_space<vmem>>, %arg5: memref<32x32xf32, #tpu.memory_space<vmem>>, %arg6: memref<1x32xf32, #tpu.memory_space<vmem>>, %arg7: memref<4x32xf32, #tpu.memory_space<vmem>>, %arg8: memref<32x32xf32, #tpu.memory_space<vmem>>, %arg9: memref<1x32xf32, #tpu.memory_space<vmem>>, %arg10: memref<32x32xf32, #tpu.memory_space<vmem>>, %arg11: memref<1x32xf32, #tpu.memory_space<vmem>>, %arg12: memref<32x4xf32, #tpu.memory_space<vmem>>, %arg13: memref<1x4xf32, #tpu.memory_space<vmem>>, %arg14: memref<8x4xf32, #tpu.memory_space<vmem>>) attributes {dimension_semantics = [#tpu.dimension_semantics<parallel>], iteration_bounds = array<i64: 1>, scalar_prefetch = 0 : i64, scratch_operands = 0 : i64, tpu.core_type = #tpu.core_type<tc>, window_params = [{transform_indices = @transform_0, window_bounds = array<i64: 8, 4>}, {transform_indices = @transform_1, window_bounds = array<i64: 8, 1>}, {pipeline_mode = #tpu.pipeline_mode<synchronous>, transform_indices = @transform_2, window_bounds = array<i64: 1, 32>}, {pipeline_mode = #tpu.pipeline_mode<synchronous>, transform_indices = @transform_3, window_bounds = array<i64: 1, 32>}, {pipeline_mode = #tpu.pipeline_mode<synchronous>, transform_indices = @transform_4, window_bounds = array<i64: 32, 32>}, {pipeline_mode = #tpu.pipeline_mode<synchronous>, transform_indices = @transform_5, window_bounds = array<i64: 1, 32>}, {pipeline_mode = #tpu.pipeline_mode<synchronous>, transform_indices = @transform_6, window_bounds = array<i64: 4, 32>}, {pipeline_mode = #tpu.pipeline_mode<synchronous>, transform_indices = @transform_7, window_bounds = array<i64: 32, 32>}, {pipeline_mode = #tpu.pipeline_mode<synchronous>, transform_indices = @transform_8, window_bounds = array<i64: 1, 32>}, {pipeline_mode = #tpu.pipeline_mode<synchronous>, transform_indices = @transform_9, window_bounds = array<i64: 32, 32>}, {pipeline_mode = #tpu.pipeline_mode<synchronous>, transform_indices = @transform_10, window_bounds = array<i64: 1, 32>}, {pipeline_mode = #tpu.pipeline_mode<synchronous>, transform_indices = @transform_11, window_bounds = array<i64: 32, 4>}, {pipeline_mode = #tpu.pipeline_mode<synchronous>, transform_indices = @transform_12, window_bounds = array<i64: 1, 4>}, {transform_indices = @transform_13, window_bounds = array<i64: 8, 4>}]} {
    %c0 = arith.constant 0 : index
    %c0_0 = arith.constant 0 : index
    %0 = vector.load %arg2[%c0, %c0_0] : memref<8x1xf32, #tpu.memory_space<vmem>>, vector<8x1xf32>
    %c0_1 = arith.constant 0 : index
    %c0_2 = arith.constant 0 : index
    %1 = vector.load %arg3[%c0_1, %c0_2] : memref<1x32xf32, #tpu.memory_space<vmem>>, vector<1x32xf32>
    %2 = vector.broadcast %0 : vector<8x1xf32> to vector<8x32xf32>
    %3 = vector.broadcast %1 : vector<1x32xf32> to vector<8x32xf32>
    %4 = arith.mulf %2, %3 : vector<8x32xf32>
    %c0_3 = arith.constant 0 : index
    %c0_4 = arith.constant 0 : index
    %5 = vector.load %arg4[%c0_3, %c0_4] : memref<1x32xf32, #tpu.memory_space<vmem>>, vector<1x32xf32>
    %6 = vector.broadcast %5 : vector<1x32xf32> to vector<8x32xf32>
    %7 = arith.addf %4, %6 : vector<8x32xf32>
    %8 = arith.negf %7 : vector<8x32xf32>
    %9 = math.exp %8 : vector<8x32xf32>
    %cst = arith.constant 1.000000e+00 : f32
    %10 = vector.broadcast %cst : f32 to vector<8x32xf32>
    %11 = arith.addf %10, %9 : vector<8x32xf32>
    %12 = arith.divf %10, %11 : vector<8x32xf32>
    %13 = arith.mulf %7, %12 : vector<8x32xf32>
    %c0_5 = arith.constant 0 : index
    %c0_6 = arith.constant 0 : index
    %14 = vector.load %arg5[%c0_5, %c0_6] : memref<32x32xf32, #tpu.memory_space<vmem>>, vector<32x32xf32>
    %cst_7 = arith.constant dense<0.000000e+00> : vector<8x32xf32>
    %15 = tpu.matmul %13, %14, %cst_7 {dimension_numbers = #tpu.dot_dimension_numbers<[1], [0], [0], [1], [0, 0, 1, 1], [], []>} : vector<8x32xf32>, vector<32x32xf32>, vector<8x32xf32> -> vector<8x32xf32>
    %c0_8 = arith.constant 0 : index
    %c0_9 = arith.constant 0 : index
    %16 = vector.load %arg6[%c0_8, %c0_9] : memref<1x32xf32, #tpu.memory_space<vmem>>, vector<1x32xf32>
    %17 = vector.broadcast %16 : vector<1x32xf32> to vector<8x32xf32>
    %18 = arith.addf %15, %17 : vector<8x32xf32>
    %19 = arith.negf %18 : vector<8x32xf32>
    %20 = math.exp %19 : vector<8x32xf32>
    %cst_10 = arith.constant 1.000000e+00 : f32
    %21 = vector.broadcast %cst_10 : f32 to vector<8x32xf32>
    %22 = arith.addf %21, %20 : vector<8x32xf32>
    %23 = arith.divf %21, %22 : vector<8x32xf32>
    %24 = arith.mulf %18, %23 : vector<8x32xf32>
    %c0_11 = arith.constant 0 : index
    %c0_12 = arith.constant 0 : index
    %25 = vector.load %arg1[%c0_11, %c0_12] : memref<8x4xf32, #tpu.memory_space<vmem>>, vector<8x4xf32>
    %c0_13 = arith.constant 0 : index
    %c0_14 = arith.constant 0 : index
    %26 = vector.load %arg8[%c0_13, %c0_14] : memref<32x32xf32, #tpu.memory_space<vmem>>, vector<32x32xf32>
    %cst_15 = arith.constant dense<0.000000e+00> : vector<8x32xf32>
    %27 = tpu.matmul %24, %26, %cst_15 {dimension_numbers = #tpu.dot_dimension_numbers<[1], [0], [0], [1], [0, 0, 1, 1], [], []>} : vector<8x32xf32>, vector<32x32xf32>, vector<8x32xf32> -> vector<8x32xf32>
    %c0_16 = arith.constant 0 : index
    %c0_17 = arith.constant 0 : index
    %28 = vector.load %arg9[%c0_16, %c0_17] : memref<1x32xf32, #tpu.memory_space<vmem>>, vector<1x32xf32>
    %29 = vector.broadcast %28 : vector<1x32xf32> to vector<8x32xf32>
    %30 = arith.addf %27, %29 : vector<8x32xf32>
    %31 = vector.extract_strided_slice %25 {offsets = [0, 0], sizes = [8, 1], strides = [1, 1]} : vector<8x4xf32> to vector<8x1xf32>
    %c0_18 = arith.constant 0 : index
    %c0_19 = arith.constant 0 : index
    %32 = vector.load %arg7[%c0_18, %c0_19] : memref<4x32xf32, #tpu.memory_space<vmem>>, vector<1x32xf32>
    %33 = vector.broadcast %31 : vector<8x1xf32> to vector<8x32xf32>
    %34 = vector.broadcast %32 : vector<1x32xf32> to vector<8x32xf32>
    %35 = arith.mulf %33, %34 : vector<8x32xf32>
    %36 = arith.addf %30, %35 : vector<8x32xf32>
    %37 = vector.extract_strided_slice %25 {offsets = [0, 1], sizes = [8, 1], strides = [1, 1]} : vector<8x4xf32> to vector<8x1xf32>
    %c1 = arith.constant 1 : index
    %c0_20 = arith.constant 0 : index
    %38 = vector.load %arg7[%c1, %c0_20] : memref<4x32xf32, #tpu.memory_space<vmem>>, vector<1x32xf32>
    %39 = vector.broadcast %37 : vector<8x1xf32> to vector<8x32xf32>
    %40 = vector.broadcast %38 : vector<1x32xf32> to vector<8x32xf32>
    %41 = arith.mulf %39, %40 : vector<8x32xf32>
    %42 = arith.addf %36, %41 : vector<8x32xf32>
    %43 = vector.extract_strided_slice %25 {offsets = [0, 2], sizes = [8, 1], strides = [1, 1]} : vector<8x4xf32> to vector<8x1xf32>
    %c2 = arith.constant 2 : index
    %c0_21 = arith.constant 0 : index
    %44 = vector.load %arg7[%c2, %c0_21] : memref<4x32xf32, #tpu.memory_space<vmem>>, vector<1x32xf32>
    %45 = vector.broadcast %43 : vector<8x1xf32> to vector<8x32xf32>
    %46 = vector.broadcast %44 : vector<1x32xf32> to vector<8x32xf32>
    %47 = arith.mulf %45, %46 : vector<8x32xf32>
    %48 = arith.addf %42, %47 : vector<8x32xf32>
    %49 = vector.extract_strided_slice %25 {offsets = [0, 3], sizes = [8, 1], strides = [1, 1]} : vector<8x4xf32> to vector<8x1xf32>
    %c3 = arith.constant 3 : index
    %c0_22 = arith.constant 0 : index
    %50 = vector.load %arg7[%c3, %c0_22] : memref<4x32xf32, #tpu.memory_space<vmem>>, vector<1x32xf32>
    %51 = vector.broadcast %49 : vector<8x1xf32> to vector<8x32xf32>
    %52 = vector.broadcast %50 : vector<1x32xf32> to vector<8x32xf32>
    %53 = arith.mulf %51, %52 : vector<8x32xf32>
    %54 = arith.addf %48, %53 : vector<8x32xf32>
    %55 = arith.negf %54 : vector<8x32xf32>
    %56 = math.exp %55 : vector<8x32xf32>
    %cst_23 = arith.constant 1.000000e+00 : f32
    %57 = vector.broadcast %cst_23 : f32 to vector<8x32xf32>
    %58 = arith.addf %57, %56 : vector<8x32xf32>
    %59 = arith.divf %57, %58 : vector<8x32xf32>
    %60 = arith.mulf %54, %59 : vector<8x32xf32>
    %c0_24 = arith.constant 0 : index
    %c0_25 = arith.constant 0 : index
    %61 = vector.load %arg10[%c0_24, %c0_25] : memref<32x32xf32, #tpu.memory_space<vmem>>, vector<32x32xf32>
    %cst_26 = arith.constant dense<0.000000e+00> : vector<8x32xf32>
    %62 = tpu.matmul %60, %61, %cst_26 {dimension_numbers = #tpu.dot_dimension_numbers<[1], [0], [0], [1], [0, 0, 1, 1], [], []>} : vector<8x32xf32>, vector<32x32xf32>, vector<8x32xf32> -> vector<8x32xf32>
    %c0_27 = arith.constant 0 : index
    %c0_28 = arith.constant 0 : index
    %63 = vector.load %arg11[%c0_27, %c0_28] : memref<1x32xf32, #tpu.memory_space<vmem>>, vector<1x32xf32>
    %64 = vector.broadcast %63 : vector<1x32xf32> to vector<8x32xf32>
    %65 = arith.addf %62, %64 : vector<8x32xf32>
    %66 = arith.negf %65 : vector<8x32xf32>
    %67 = math.exp %66 : vector<8x32xf32>
    %cst_29 = arith.constant 1.000000e+00 : f32
    %68 = vector.broadcast %cst_29 : f32 to vector<8x32xf32>
    %69 = arith.addf %68, %67 : vector<8x32xf32>
    %70 = arith.divf %68, %69 : vector<8x32xf32>
    %71 = arith.mulf %65, %70 : vector<8x32xf32>
    %c0_30 = arith.constant 0 : index
    %c0_31 = arith.constant 0 : index
    %72 = vector.load %arg12[%c0_30, %c0_31] : memref<32x4xf32, #tpu.memory_space<vmem>>, vector<32x4xf32>
    %cst_32 = arith.constant dense<0.000000e+00> : vector<8x4xf32>
    %73 = tpu.matmul %71, %72, %cst_32 {dimension_numbers = #tpu.dot_dimension_numbers<[1], [0], [0], [1], [0, 0, 1, 1], [], []>} : vector<8x32xf32>, vector<32x4xf32>, vector<8x4xf32> -> vector<8x4xf32>
    %c0_33 = arith.constant 0 : index
    %c0_34 = arith.constant 0 : index
    %74 = vector.load %arg13[%c0_33, %c0_34] : memref<1x4xf32, #tpu.memory_space<vmem>>, vector<1x4xf32>
    %75 = vector.broadcast %74 : vector<1x4xf32> to vector<8x4xf32>
    %76 = arith.addf %73, %75 : vector<8x4xf32>
    %c0_35 = arith.constant 0 : index
    %c0_36 = arith.constant 0 : index
    %77 = vector.load %arg14[%c0_35, %c0_36] : memref<8x4xf32, #tpu.memory_space<vmem>>, vector<8x4xf32>
    tpu.vector_store %arg14[%c0_35, %c0_36], %76 {strides = array<i32>} : memref<8x4xf32, #tpu.memory_space<vmem>>, vector<8x4xf32>,
    return
  }
  func.func @transform_0(%arg0: i32) -> (i32, i32) {
    %c0_i32 = arith.constant 0 : i32
    %c0_i32_0 = arith.constant 0 : i32
    return %arg0, %c0_i32 : i32, i32
  }
  func.func @transform_1(%arg0: i32) -> (i32, i32) {
    %c0_i32 = arith.constant 0 : i32
    %c0_i32_0 = arith.constant 0 : i32
    return %arg0, %c0_i32 : i32, i32
  }
  func.func @transform_2(%arg0: i32) -> (i32, i32) {
    %c0_i32 = arith.constant 0 : i32
    %c0_i32_0 = arith.constant 0 : i32
    %c0_i32_1 = arith.constant 0 : i32
    return %c0_i32, %c0_i32_0 : i32, i32
  }
  func.func @transform_3(%arg0: i32) -> (i32, i32) {
    %c0_i32 = arith.constant 0 : i32
    %c0_i32_0 = arith.constant 0 : i32
    %c0_i32_1 = arith.constant 0 : i32
    return %c0_i32, %c0_i32_0 : i32, i32
  }
  func.func @transform_4(%arg0: i32) -> (i32, i32) {
    %c0_i32 = arith.constant 0 : i32
    %c0_i32_0 = arith.constant 0 : i32
    %c0_i32_1 = arith.constant 0 : i32
    return %c0_i32, %c0_i32_0 : i32, i32
  }
  func.func @transform_5(%arg0: i32) -> (i32, i32) {
    %c0_i32 = arith.constant 0 : i32
    %c0_i32_0 = arith.constant 0 : i32
    %c0_i32_1 = arith.constant 0 : i32
    return %c0_i32, %c0_i32_0 : i32, i32
  }
  func.func @transform_6(%arg0: i32) -> (i32, i32) {
    %c0_i32 = arith.constant 0 : i32
    %c0_i32_0 = arith.constant 0 : i32
    %c0_i32_1 = arith.constant 0 : i32
    return %c0_i32, %c0_i32_0 : i32, i32
  }
  func.func @transform_7(%arg0: i32) -> (i32, i32) {
    %c0_i32 = arith.constant 0 : i32
    %c0_i32_0 = arith.constant 0 : i32
    %c0_i32_1 = arith.constant 0 : i32
    return %c0_i32, %c0_i32_0 : i32, i32
  }
  func.func @transform_8(%arg0: i32) -> (i32, i32) {
    %c0_i32 = arith.constant 0 : i32
    %c0_i32_0 = arith.constant 0 : i32
    %c0_i32_1 = arith.constant 0 : i32
    return %c0_i32, %c0_i32_0 : i32, i32
  }
  func.func @transform_9(%arg0: i32) -> (i32, i32) {
    %c0_i32 = arith.constant 0 : i32
    %c0_i32_0 = arith.constant 0 : i32
    %c0_i32_1 = arith.constant 0 : i32
    return %c0_i32, %c0_i32_0 : i32, i32
  }
  func.func @transform_10(%arg0: i32) -> (i32, i32) {
    %c0_i32 = arith.constant 0 : i32
    %c0_i32_0 = arith.constant 0 : i32
    %c0_i32_1 = arith.constant 0 : i32
    return %c0_i32, %c0_i32_0 : i32, i32
  }
  func.func @transform_11(%arg0: i32) -> (i32, i32) {
    %c0_i32 = arith.constant 0 : i32
    %c0_i32_0 = arith.constant 0 : i32
    %c0_i32_1 = arith.constant 0 : i32
    return %c0_i32, %c0_i32_0 : i32, i32
  }
  func.func @transform_12(%arg0: i32) -> (i32, i32) {
    %c0_i32 = arith.constant 0 : i32
    %c0_i32_0 = arith.constant 0 : i32
    %c0_i32_1 = arith.constant 0 : i32
    return %c0_i32, %c0_i32_0 : i32, i32
  }
  func.func @transform_13(%arg0: i32) -> (i32, i32) {
    %c0_i32 = arith.constant 0 : i32
    %c0_i32_0 = arith.constant 0 : i32
    return %arg0, %c0_i32 : i32, i32
  }
}

</mosaic_0001>

<bundles_post_ra>
// kernel: tpu_custom_call.1
= control target key start
LH: loop header
LB: loop body
LE: loop exit
PB: predicated region body
PF: predicated region fallthrough
CT: control target
= control target key end

     0   :  { %18 = vsyncpa [#allocation3], 0  ;;  %s933_s0 = inlined_call_operand.vmem [shape: f32[8,4], index: 0, kind: input, shape index: {}]   ;;  %s934_s1 = inlined_call_operand.vmem [shape: f32[8,1], index: 1, kind: input, shape index: {}]   ;;  %s935_s2 = inlined_call_operand.hbm [shape: f32[1,32], index: 2, kind: input, shape index: {}]   ;;  %s936_s3 = inlined_call_operand.hbm [shape: f32[1,32], index: 3, kind: input, shape index: {}]   ;;  %s937_s4 = inlined_call_operand.vmem [shape: f32[32,32], index: 4, kind: input, shape index: {}]   ;;  %s938_s5 = inlined_call_operand.vmem [shape: f32[1,32], index: 5, kind: input, shape index: {}]   ;;  %s939_s6 = inlined_call_operand.vmem [shape: f32[4,32], index: 6, kind: input, shape index: {}]   ;;  %s940_s7 = inlined_call_operand.vmem [shape: f32[32,32], index: 7, kind: input, shape index: {}]   ;;  %s941_s8 = inlined_call_operand.vmem [shape: f32[1,32], index: 8, kind: input, shape index: {}]   ;;  %s942_s9 = inlined_call_operand.hbm [shape: f32[32,32], index: 9, kind: input, shape index: {}]   ;;  %s943_s10 = inlined_call_operand.vmem [shape: f32[1,32], index: 10, kind: input, shape index: {}]   ;;  %s944_s11 = inlined_call_operand.vmem [shape: f32[32,4], index: 11, kind: input, shape index: {}]   ;;  %s945_s12 = inlined_call_operand.vmem [shape: f32[1,4], index: 12, kind: input, shape index: {}]   ;;  %s946_s13 = inlined_call_operand.vmem [shape: f32[8,4], index: 13, kind: output, shape index: {}]  }
   0x1   :  { %19 = vsyncpa [#allocation5], 0  ;;  %s730_s25 = smov [#allocation4]   ;;  %s731_s27 = smov [#allocation2]  }
   0x2   :  { %s40_s26 = sshll.u32 %s730_s25, 4  ;;  %s30_s28 = sshll.u32 %s731_s27, 4  ;;  %s41_s26 = int_to_ptr.vmem [resolvable:$true] %s40_s26  ;;  %s31_s28 = int_to_ptr.vmem [resolvable:$true] %s30_s28 }
   0x3   :  { %s660_s14 = scalar_lea.hbm %s936_s3, 16 }
   0x4   :  { %p661_p0 = scmp.ne.s32.totalorder %s936_s3, %s660_s14  ;;  %p664_p1 = scmp.lt.u32.totalorder %s660_s14, %s936_s3 }
   0x6   :  { %p666_p2 = pnand %p664_p1, %p661_p0 }
   0x8   :  { %669 = shalt.err (!%p666_p2)
}
   0x9   :  { %s670_s19 = scalar_lea.vmem %s41_s26, 16  ;;  %s674_s20 = scalar_lea.vmem %s41_s26, 32 }
   0xa   :  { %p671_p3 = scmp.ne.s32.totalorder %s41_s26, %s670_s19  ;;  %p675_p4 = scmp.lt.s32.totalorder %s41_s26, %s41_s26 }
   0xb   :  { %p676_p5 = scmp.lt.s32.totalorder %s674_s20, %s670_s19 }
   0xd   :  { %p677_p6 = por %p676_p5, %p675_p4 }
   0xf   :  { %p678_p7 = pnand %p677_p6, %p671_p3 }
  0x11   :  { %681 = shalt.err (!%p678_p7)
}
  0x12   :  { %43 = dma.hbm_to_vmem [thread:$0]  %s936_s3, 16, %s41_s26, [#allocation5]  }
  0x13   :  { %s682_s25 = scalar_lea.hbm %s935_s2, 16 }
  0x14   :  { %p683_p8 = scmp.ne.s32.totalorder %s935_s2, %s682_s25  ;;  %p686_p9 = scmp.lt.u32.totalorder %s682_s25, %s935_s2 }
  0x16   :  { %p688_p10 = pnand %p686_p9, %p683_p8 }
  0x18   :  { %691 = shalt.err (!%p688_p10)
}
  0x19   :  { %s692_s15 = scalar_lea.vmem %s31_s28, 16  ;;  %s696_s16 = scalar_lea.vmem %s31_s28, 32 }
  0x1a   :  { %p693_p11 = scmp.ne.s32.totalorder %s31_s28, %s692_s15  ;;  %p697_p12 = scmp.lt.s32.totalorder %s31_s28, %s31_s28 }
  0x1b   :  { %p698_p13 = scmp.lt.s32.totalorder %s696_s16, %s692_s15 }
  0x1d   :  { %p699_p0 = por %p698_p13, %p697_p12 }
  0x1f   :  { %p700_p1 = pnand %p699_p0, %p693_p11 }
  0x21   :  { %703 = shalt.err (!%p700_p1)
}
  0x22   :  { %33 = dma.hbm_to_vmem [thread:$0]  %s935_s2, 16, %s31_s28, [#allocation3]  }
  0x23   :  { %s732_s17 = smov [#allocation6]   ;;  %s704_s21 = scalar_lea.hbm %s942_s9, 512 }
  0x24   :  { %s59_s18 = sshll.u32 %s732_s17, 4  ;;  %p705_p2 = scmp.ne.s32.totalorder %s942_s9, %s704_s21  ;;  %s60_s18 = int_to_ptr.vmem [resolvable:$true] %s59_s18 }
  0x25   :  { %p708_p3 = scmp.lt.u32.totalorder %s704_s21, %s942_s9 }
  0x27   :  { %p710_p4 = pnand %p708_p3, %p705_p2 }
  0x29   :  { %713 = shalt.err (!%p710_p4)
}
  0x2a   :  { %s714_s27 = scalar_lea.vmem %s60_s18, 512  ;;  %p719_p6 = scmp.lt.s32.totalorder %s60_s18, %s60_s18 }
  0x2b   :  { %p715_p5 = scmp.ne.s32.totalorder %s60_s18, %s714_s27  ;;  %p720_p7 = scmp.lt.s32.totalorder %s714_s27, %s714_s27 }
  0x2d   :  { %p721_p8 = por %p720_p7, %p719_p6 }
  0x2f   :  { %p722_p9 = pnand %p721_p8, %p715_p5 }
  0x31   :  { %725 = shalt.err (!%p722_p9)
}
  0x32   :  { %s733_s2 = smov 128   ;;  %s734_s28 = smov 8  }
  0x33   :  { %65 = dma.hbm_to_vmem [thread:$0]  %s942_s9, 512, %s60_s18, [#allocation5], %s733_s2, %s733_s2, %s734_s28  }
  0x34   :  { %726 = dma.done.wait [#allocation3], 16  }
  0x35   :  { %727 = vsyncadd [#allocation3], 4294967280 }
  0x36   :  { %728 = dma.done.wait [#allocation5], 528  }
  0x37   :  { %729 = vsyncadd [#allocation5], 4294966768  ;;  %v735_v0 = vmov 0   ;;  %v81_v1 = vld [vmem:[%s934_s1] sm:$0xff]  ;;  %v111_v4 = vld [vmem:[%s937_s4 + $0x8] sm:$0xff]  ;;  %v736_v6 = vmov 0.0|0.0  }
  0x38   :  { %640 = vset.pattern.permute.xlu0 %v735_v0  ;;  %v202_v2 = vld [vmem:[%s933_s0] sm:$0xff]  ;;  %604 = vmatprep.subr.bf16.mxu0 %v736_v6  ;;  %v112_v7 = vld [vmem:[%s937_s4 + $0x10] sm:$0xff]  ;;  %v113_v8 = vld [vmem:[%s937_s4 + $0x18] sm:$0xff]  ;;  %vm737_vm0 = vmmov 0   ;;  %v738_v10 = vmov 0.0   ;;  %vm121_vm1 = vcmask 261120  }
  0x39   :  { %85 = vperm.xlu0 %640, %v81_v1   ;;  %v110_v3 = vld [vmem:[%s937_s4] sm:$0xff]  ;;  %610 = vmatprep.subr.bf16.mxu1 %v736_v6  ;;  %v608_v9 = vpack.c.bf16 %v113_v8, %v112_v7  ;;  %v204_v22 = vld [vmem:[%s940_s7 + $0x8] sm:$0xff]  ;;  %v205_v24 = vld [vmem:[%s940_s7 + $0x10] sm:$0xff]  ;;  %v739_v27 = vmov 1   ;;  %v740_v28 = vmov 3   ;;  %v741_v29 = vmov 2  }
  0x3a   :  { %v605_v5 = vpack.c.bf16 %v111_v4, %v110_v3  ;;  %568 = vmatprep.mubr.msk.f32.mxu0 %vm737_vm0, %v738_v10  ;;  %579 = vmatprep.mubr.msk.f32.mxu1 %vm737_vm0, %v738_v10  ;;  %v522_v11 = vld [vmem:[#allocation2] ss:$0 sm:$0xff]  ;;  %v523_v12 = vld [vmem:[#allocation4] ss:$0 sm:$0xff]  ;;  %v206_v25 = vld [vmem:[%s940_s7 + $0x18] sm:$0xff]  ;;  %vm514_vm2 = vcmask 31744  }
  0x3b   :  { %v203_v21 = vld [vmem:[%s940_s7] sm:$0xff]  ;;  %v614_v26 = vpack.c.bf16 %v206_v25, %v205_v24  ;;  %641 = vset.pattern.permute.xlu1 %v739_v27  ;;  %v340_v40 = vld [vmem:[#allocation6 + $0x8] sm:$0xff]  ;;  %v341_v42 = vld [vmem:[#allocation6 + $0x10] sm:$0xff] }
  0x3c   :  { %606 = vmatpush3.bf16.msra.mxu0 %v605_v5  ;;  %v611_v23 = vpack.c.bf16 %v204_v22, %v203_v21  ;;  %301 = vperm.xlu1 %641, %v202_v2   ;;  %v525_v30 = vld [vmem:[%s938_s5] ss:$0 sm:$0xff]  ;;  %v339_v39 = vld [vmem:[#allocation6] sm:$0xff]  ;;  %v531_v49 = vld [vmem:[%s939_s6 + $0x1] ss:$0 sm:$0xff] }
  0x3d   :  { %290 = vperm.xlu0 %640, %v202_v2   ;;  %607 = vmatprep.subr.bf16.mxu0 %v736_v6  ;;  %v617_v41 = vpack.c.bf16 %v340_v40, %v339_v39  ;;  %v342_v43 = vld [vmem:[#allocation6 + $0x18] sm:$0xff]  ;;  %v431_v8 = vld [vmem:[%s944_s11 + $0x8] sm:$0xff] }
  0x3e   :  { %612 = vmatpush3.bf16.msra.mxu1 %v611_v23  ;;  %v620_v44 = vpack.c.bf16 %v342_v43, %v341_v42  ;;  %v530_v46 = vld [vmem:[%s939_s6] ss:$0 sm:$0xff]  ;;  %v532_v51 = vld [vmem:[%s939_s6 + $0x2] ss:$0 sm:$0xff]  ;;  %v533_v56 = vld [vmem:[%s939_s6 + $0x3] ss:$0 sm:$0xff] }
  0x3f   :  { %613 = vmatprep.subr.bf16.mxu1 %v736_v6  ;;  %v528_v48 = vld [vmem:[%s941_s8] ss:$0 sm:$0xff] }
  0x40   :  { %609 = vmatpush3.bf16.msra.mxu0 %v608_v9  ;;  %642 = vset.pattern.permute.xlu1 %v741_v29  ;;  %v430_v7 = vld [vmem:[%s944_s11] sm:$0xff] }
  0x41   :  { %616 = vmatprep.subr.bf16.mxu0 %v736_v6  ;;  %643 = vset.pattern.permute.xlu0 %v740_v28  ;;  %v623_v9 = vpack.c.bf16 %v431_v8, %v430_v7  ;;  %v538_v21 = vld [vmem:[%s945_s12] ss:$0 sm:$0xff] }
  0x42   :  { %615 = vmatpush3.bf16.msra.mxu1 %v614_v26  ;;  %323 = vperm.xlu0 %643, %v202_v2  }
  0x43   :  { %622 = vmatprep.subr.bf16.mxu1 %v736_v6  ;;  %312 = vperm.xlu1 %642, %v202_v2  }
  0xb8   :  { %v86_v13 = vpop.permute.xlu0 %85 }
  0xb9   :  { %v94_v14 = vmul.f32 %v522_v11, %v86_v13  ;;  %v433_v11 = vld [vmem:[%s944_s11 + $0x18] sm:$0xff]  ;;  %v535_v13 = vld [vmem:[%s943_s10] ss:$0 sm:$0xff] }
  0xbb   :  { %v102_v15 = vadd.f32 %v523_v12, %v94_v14  ;;  %v302_v45 = vpop.permute.xlu1 %301 }
  0xbc   :  { %v291_v47 = vpop.permute.xlu0 %290  ;;  %v308_v58 = vmul.f32 %v531_v49, %v302_v45 }
  0xbd   :  { %v524_v16 = vmul.f32 -1.442695, %v102_v15  ;;  %v297_v53 = vmul.f32 %v530_v46, %v291_v47 }
  0xbf   :  { %644 = vpow2.f32 %v524_v16 }
  0xc1   :  { %v324_v57 = vpop.permute.xlu0 %323 }
  0xc2   :  { %v313_v52 = vpop.permute.xlu1 %312  ;;  %v330_v62 = vmul.f32 %v533_v56, %v324_v57 }
  0xc3   :  { %v319_v60 = vmul.f32 %v532_v51, %v313_v52 }
  0xc9   :  { %v645_v17 = vpop.eup %644 }
  0xca   :  { %v106_v18 = vadd.f32 1.0, %v645_v17 }
  0xcc   :  { %646 = vrcp.f32 %v106_v18 }
  0xd6   :  { %v647_v19 = vpop.eup %646 }
  0xd7   :  { %v109_v20 = vmul.f32 %v647_v19, %v102_v15 }
  0xd9   :  { %569 = vmatmul.mubr.msk.f32.vlgmr.msra.gmra.mrb[0].mxu0 %vm121_vm1, %v109_v20 }
  0xda   :  { %590 = vmatprep.mubr.msk.f32.mxu0 %vm737_vm0, %v738_v10  ;;  %618 = vmatpush3.bf16.msra.mxu0 %v617_v41 }
  0xdb   :  { %619 = vmatprep.subr.bf16.mxu0 %v736_v6 }
  0xde   :  { %621 = vmatpush3.bf16.msra.mxu0 %v620_v44 }
 0x1ac   :  { %v191_v31 = vpop.f32.mrb[0].mxu0 }
 0x1ad   :  { %v192_v32 = vadd.f32 %v525_v30, %v191_v31  ;;  %v570_v33 = vpop.f32.mrb[1].mxu0 }
 0x1af   :  { %v527_v34 = vmul.f32 -1.442695, %v192_v32 }
 0x1b1   :  { %648 = vpow2.f32 %v527_v34 }
 0x1bb   :  { %v649_v35 = vpop.eup %648 }
 0x1bc   :  { %v198_v36 = vadd.f32 1.0, %v649_v35 }
 0x1be   :  { %650 = vrcp.f32 %v198_v36 }
 0x1c8   :  { %v651_v37 = vpop.eup %650 }
 0x1c9   :  { %v201_v38 = vmul.f32 %v651_v37, %v192_v32 }
 0x1cb   :  { %580 = vmatmul.mubr.msk.f32.vlgmr.msra.gmra.mrb[0].mxu1 %vm121_vm1, %v201_v38 }
 0x1cc   :  { %601 = vmatprep.mubr.msk.f32.mxu1 %vm737_vm0, %v738_v10  ;;  %624 = vmatpush3.bf16.msra.mxu1 %v623_v9  ;;  %v432_v10 = vld [vmem:[%s944_s11 + $0x10] sm:$0xff] }
 0x1cd   :  { %625 = vmatprep.subr.bf16.mxu1 %v736_v6  ;;  %v626_v12 = vpack.c.bf16 %v433_v11, %v432_v10 }
 0x1d0   :  { %627 = vmatpush3.bf16.msra.mxu1 %v626_v12 }
 0x29e   :  { %v283_v50 = vpop.f32.mrb[0].mxu1 }
 0x29f   :  { %v284_v54 = vadd.f32 %v528_v48, %v283_v50  ;;  %v581_v55 = vpop.f32.mrb[1].mxu1 }
 0x2a1   :  { %v298_v59 = vadd.f32 %v297_v53, %v284_v54 }
 0x2a3   :  { %v309_v61 = vadd.f32 %v308_v58, %v298_v59 }
 0x2a5   :  { %v320_v63 = vadd.f32 %v319_v60, %v309_v61 }
 0x2a7   :  { %v331_v0 = vadd.f32 %v330_v62, %v320_v63 }
 0x2a9   :  { %v534_v1 = vmul.f32 -1.442695, %v331_v0 }
 0x2ab   :  { %652 = vpow2.f32 %v534_v1 }
 0x2b5   :  { %v653_v2 = vpop.eup %652 }
 0x2b6   :  { %v335_v3 = vadd.f32 1.0, %v653_v2 }
 0x2b8   :  { %654 = vrcp.f32 %v335_v3 }
 0x2c2   :  { %v655_v4 = vpop.eup %654 }
 0x2c3   :  { %v338_v5 = vmul.f32 %v655_v4, %v331_v0 }
 0x2c5   :  { %591 = vmatmul.mubr.msk.f32.vlgmr.msra.gmra.mrb[2].mxu0 %vm121_vm1, %v338_v5 }
 0x398   :  { %v419_v14 = vpop.f32.mrb[2].mxu0 }
 0x399   :  { %v420_v15 = vadd.f32 %v535_v13, %v419_v14  ;;  %v592_v16 = vpop.f32.mrb[3].mxu0 }
 0x39b   :  { %v537_v17 = vmul.f32 -1.442695, %v420_v15 }
 0x39d   :  { %656 = vpow2.f32 %v537_v17 }
 0x3a7   :  { %v657_v6 = vpop.eup %656 }
 0x3a8   :  { %v426_v18 = vadd.f32 1.0, %v657_v6 }
 0x3aa   :  { %658 = vrcp.f32 %v426_v18 }
 0x3b4   :  { %v659_v19 = vpop.eup %658 }
 0x3b5   :  { %v429_v20 = vmul.f32 %v659_v19, %v420_v15 }
 0x3b7   :  { %602 = vmatmul.mubr.msk.f32.vlgmr.msra.gmra.mrb[2].mxu1 %vm121_vm1, %v429_v20 }
 0x48a   :  { %v510_v22 = vpop.f32.mrb[2].mxu1 }
 0x48b   :  { %v511_v23 = vadd.f32 %v538_v21, %v510_v22  ;;  %v603_v24 = vpop.f32.mrb[3].mxu1 }
 0x48d   :  { %515 = vst.msk [vmem:[%s946_s13] sm:$0xff] %vm514_vm2, %v511_v23 }
 0x48e   :  { %520 = vsyncpa [#allocation3], 1 }
 0x48f   :  { %521 = vsyncpa [#allocation5], 1 }

</bundles_post_ra>
